<compile_context>
chip_gen: v7x
topology: tpu7x:2x2x1
jax: 0.10.0
libtpu: 0.0.40
codegen_flags: <defaults>
</compile_context>

<pallas_src>
import functools

import jax
import jax.numpy as jnp
from jax.experimental import pallas as pl
from jax.experimental.pallas import tpu as pltpu

HIDDEN = 30          # fixed by the module (fc1 out / fc2 in)
LANE = 128           # TPU lane width


def _round_up(x, m):
    return ((x + m - 1) // m) * m


def mlp_kernel(x_ref, p_ref, o_ref, *, k1):
    # x_ref: (TILE_B, k1)  augmented input (state | 1 | 0-pad), k1 multiple of 8
    # p_ref: (k1 + 128, 128) packed params: rows [0:k1) = W1|b1 slab,
    #        rows [k1:k1+128) = W2|b2 slab.  Biases already folded in.
    x = x_ref[...]
    w1 = p_ref[0:k1, :]          # (k1, 128)   -- tile-aligned static slice
    w2 = p_ref[k1:, :]           # (128, 128)
    h = jnp.maximum(
        jnp.dot(x, w1, preferred_element_type=jnp.float32), 0.0)   # MXU + VPU
    # h lane 30 == relu(1.0) == 1.0, so h @ w2 also adds b2 (row 30 of w2).
    o_ref[...] = jnp.dot(h, w2, preferred_element_type=jnp.float32).astype(
        o_ref.dtype)


def pack_params(w1, b1, w2, b2):
    """Pack PyTorch-layout params into ONE lane-dense f32 slab.

    w1: (30, input_size), b1: (30,), w2: (nb_action, 30), b2: (nb_action,)
    Returns params of shape (k1 + 128, 128) with both biases folded in.
    """
    hidden, input_size = w1.shape
    nb_action = w2.shape[0]
    assert hidden == HIDDEN and hidden < LANE and nb_action <= LANE

    k1 = _round_up(input_size + 1, 8)            # sublane-aligned W1 slab rows
    slab1 = jnp.zeros((k1, LANE), jnp.float32)
    slab1 = slab1.at[:input_size, :hidden].set(w1.T.astype(jnp.float32))
    slab1 = slab1.at[input_size, :hidden].set(b1.astype(jnp.float32))
    slab1 = slab1.at[input_size, hidden].set(1.0)   # makes h[:, 30] == 1.0

    slab2 = jnp.zeros((LANE, LANE), jnp.float32)
    slab2 = slab2.at[:hidden, :nb_action].set(w2.T.astype(jnp.float32))
    slab2 = slab2.at[hidden, :nb_action].set(b2.astype(jnp.float32))  # b2 row

    return jnp.concatenate([slab1, slab2], axis=0)   # (k1 + 128, 128)


def network_forward(state, params, *, nb_action, tile_b=512):
    """state: (B, input_size) f32; params: packed slab from pack_params.
    Returns (B, nb_action) f32 == fc2(relu(fc1(state)))."""
    B, input_size = state.shape
    k1 = params.shape[0] - LANE

    # Batch tiling: single block for small B, 512-row tiles (megacore-parallel)
    # for large replay batches.
    tile_b_eff = min(tile_b, _round_up(B, 8))
    B_pad = _round_up(B, tile_b_eff)

    # Augmented, sublane/lane-friendly input: [state | 1 | zero-pad].
    x_aug = jnp.zeros((B_pad, k1), jnp.float32)
    x_aug = x_aug.at[:B, :input_size].set(state.astype(jnp.float32))
    x_aug = x_aug.at[:, input_size].set(1.0)      # ones column feeds b1 (& b2)

    flops = 2 * B_pad * (k1 * LANE + LANE * LANE)
    bytes_accessed = 4 * (B_pad * k1 + params.size + B_pad * LANE)

    out = pl.pallas_call(
        functools.partial(mlp_kernel, k1=k1),
        out_shape=jax.ShapeDtypeStruct((B_pad, LANE), jnp.float32),
        grid=(B_pad // tile_b_eff,),
        in_specs=[
            pl.BlockSpec((tile_b_eff, k1), lambda i: (i, 0)),
            pl.BlockSpec((k1 + LANE, LANE), lambda i: (0, 0)),  # resident params
        ],
        out_specs=pl.BlockSpec((tile_b_eff, LANE), lambda i: (i, 0)),
        compiler_params=pltpu.CompilerParams(
            dimension_semantics=("parallel",)),
        cost_estimate=pl.CostEstimate(
            flops=flops, transcendentals=0, bytes_accessed=bytes_accessed),
    )(x_aug, params)

    # Lane-dense (B_pad, 128) store inside the kernel; slice to logical shape.
    return out[:B, :nb_action]


if __name__ == "__main__":
    # Shapes implied by the module (classic self-driving-car DQN example):
    # input_size=5, nb_action=3, hidden=30 (fixed), batch=8.
    B, input_size, nb_action = 8, 5, 3

    key = jax.random.PRNGKey(0)
    k_x, k_w1, k_b1, k_w2, k_b2 = jax.random.split(key, 5)

    # nn.Linear-style init: U(-1/sqrt(fan_in), +1/sqrt(fan_in)), PyTorch layout.
    bound1 = 1.0 / jnp.sqrt(input_size)
    bound2 = 1.0 / jnp.sqrt(HIDDEN)
    w1 = jax.random.uniform(k_w1, (HIDDEN, input_size), jnp.float32, -bound1, bound1)
    b1 = jax.random.uniform(k_b1, (HIDDEN,), jnp.float32, -bound1, bound1)
    w2 = jax.random.uniform(k_w2, (nb_action, HIDDEN), jnp.float32, -bound2, bound2)
    b2 = jax.random.uniform(k_b2, (nb_action,), jnp.float32, -bound2, bound2)

    state = jax.random.normal(k_x, (B, input_size), jnp.float32)

    # Pack once; reuse across every forward call (weight residency across steps).
    params = pack_params(w1, b1, w2, b2)
    fwd = jax.jit(functools.partial(network_forward, nb_action=nb_action))

    q_values = jax.block_until_ready(fwd(state, params))

    # Pure-JAX reference of the module's forward pass.
    ref = jnp.maximum(state @ w1.T + b1, 0.0) @ w2.T + b2
    assert q_values.shape == (B, nb_action)
    assert jnp.allclose(q_values, ref, atol=1e-5, rtol=1e-5)

    print("KERNEL_OK")
</pallas_src>

<mosaic_0001>
module attributes {stable_mosaic.version = 11 : i64} {
  func.func @mlp_kernel(%arg0: i32, %arg1: memref<8x8xf32, #tpu.memory_space<vmem>>, %arg2: memref<136x128xf32, #tpu.memory_space<vmem>>, %arg3: memref<8x128xf32, #tpu.memory_space<vmem>>) attributes {dimension_semantics = [#tpu.dimension_semantics<parallel>], iteration_bounds = array<i64: 1>, scalar_prefetch = 0 : i64, scratch_operands = 0 : i64, tpu.core_type = #tpu.core_type<tc>, window_params = [{transform_indices = @transform_0, window_bounds = array<i64: 8, 8>}, {pipeline_mode = #tpu.pipeline_mode<synchronous>, transform_indices = @transform_1, window_bounds = array<i64: 136, 128>}, {transform_indices = @transform_2, window_bounds = array<i64: 8, 128>}]} {
    %c0 = arith.constant 0 : index
    %c0_0 = arith.constant 0 : index
    %0 = vector.load %arg1[%c0, %c0_0] : memref<8x8xf32, #tpu.memory_space<vmem>>, vector<8x8xf32>
    %c0_1 = arith.constant 0 : index
    %c0_2 = arith.constant 0 : index
    %1 = vector.load %arg2[%c0_1, %c0_2] : memref<136x128xf32, #tpu.memory_space<vmem>>, vector<8x128xf32>
    %c8 = arith.constant 8 : index
    %c0_3 = arith.constant 0 : index
    %2 = vector.load %arg2[%c8, %c0_3] : memref<136x128xf32, #tpu.memory_space<vmem>>, vector<128x128xf32>
    %cst = arith.constant dense<0.000000e+00> : vector<8x128xf32>
    %3 = tpu.matmul %0, %1, %cst {dimension_numbers = #tpu.dot_dimension_numbers<[1], [0], [0], [1], [0, 0, 1, 1], [], []>} : vector<8x8xf32>, vector<8x128xf32>, vector<8x128xf32> -> vector<8x128xf32>
    %cst_4 = arith.constant 0.000000e+00 : f32
    %4 = vector.broadcast %cst_4 : f32 to vector<8x128xf32>
    %5 = arith.maximumf %3, %4 : vector<8x128xf32>
    %cst_5 = arith.constant dense<0.000000e+00> : vector<8x128xf32>
    %6 = tpu.matmul %5, %2, %cst_5 {dimension_numbers = #tpu.dot_dimension_numbers<[1], [0], [0], [1], [0, 0, 1, 1], [], []>} : vector<8x128xf32>, vector<128x128xf32>, vector<8x128xf32> -> vector<8x128xf32>
    %c0_6 = arith.constant 0 : index
    %c0_7 = arith.constant 0 : index
    %7 = vector.load %arg3[%c0_6, %c0_7] : memref<8x128xf32, #tpu.memory_space<vmem>>, vector<8x128xf32>
    tpu.vector_store %arg3[%c0_6, %c0_7], %6 {strides = array<i32>} : memref<8x128xf32, #tpu.memory_space<vmem>>, vector<8x128xf32>,
    return
  }
  func.func @transform_0(%arg0: i32) -> (i32, i32) {
    %c0_i32 = arith.constant 0 : i32
    %c0_i32_0 = arith.constant 0 : i32
    return %arg0, %c0_i32 : i32, i32
  }
  func.func @transform_1(%arg0: i32) -> (i32, i32) {
    %c0_i32 = arith.constant 0 : i32
    %c0_i32_0 = arith.constant 0 : i32
    %c0_i32_1 = arith.constant 0 : i32
    return %c0_i32, %c0_i32_0 : i32, i32
  }
  func.func @transform_2(%arg0: i32) -> (i32, i32) {
    %c0_i32 = arith.constant 0 : i32
    %c0_i32_0 = arith.constant 0 : i32
    return %arg0, %c0_i32 : i32, i32
  }
}

</mosaic_0001>

<bundles_post_ra>
// kernel: network_forward.1
= control target key start
LH: loop header
LB: loop body
LE: loop exit
PB: predicated region body
PF: predicated region fallthrough
CT: control target
= control target key end

     0   :  { %7 = vsyncpa [#allocation3], 0  ;;  %s308_s9 = smov [#allocation2]   ;;  %s347_s0 = inlined_call_operand.vmem [shape: f32[8,8], index: 0, kind: input, shape index: {}]   ;;  %s348_s1 = inlined_call_operand.hbm [shape: f32[136,128], index: 1, kind: input, shape index: {}]   ;;  %s349_s2 = inlined_call_operand.vmem [shape: f32[8,128], index: 2, kind: output, shape index: {}]  }
   0x1   :  { %s15_s10 = sshll.u32 %s308_s9, 4  ;;  %s284_s13 = scalar_lea.hbm %s348_s1, 2176  ;;  %s16_s10 = int_to_ptr.vmem [resolvable:$true] %s15_s10 }
   0x2   :  { %p285_p0 = scmp.ne.s32.totalorder %s348_s1, %s284_s13  ;;  %p288_p1 = scmp.lt.u32.totalorder %s284_s13, %s348_s1 }
   0x4   :  { %p290_p2 = pnand %p288_p1, %p285_p0 }
   0x6   :  { %293 = shalt.err (!%p290_p2)
}
   0x7   :  { %s294_s18 = scalar_lea.vmem %s16_s10, 2176  ;;  %p299_p4 = scmp.lt.s32.totalorder %s16_s10, %s16_s10 }
   0x8   :  { %p295_p3 = scmp.ne.s32.totalorder %s16_s10, %s294_s18  ;;  %p300_p5 = scmp.lt.s32.totalorder %s294_s18, %s294_s18 }
   0xa   :  { %p301_p6 = por %p300_p5, %p299_p4 }
   0xc   :  { %p302_p7 = pnand %p301_p6, %p295_p3 }
   0xe   :  { %305 = shalt.err (!%p302_p7)
}
   0xf   :  { %s309_s19 = smov 128   ;;  %s310_s20 = smov 8  }
  0x10   :  { %21 = dma.hbm_to_vmem [thread:$0]  %s348_s1, 2176, %s16_s10, [#allocation3], %s309_s19, %s309_s19, %s310_s20  }
  0x11   :  { %306 = dma.done.wait [#allocation3], 2176  }
  0x12   :  { %307 = vsyncadd [#allocation3], 4294965120  ;;  %v311_v0 = vmov 0.0   ;;  %vm312_vm0 = vmmov 0   ;;  %v313_v1 = vmov 0.0|0.0   ;;  %vm43_vm1 = vcmask 64512  }
  0x13   :  { %214 = vmatprep.subr.mxu0 %v311_v0  ;;  %216 = vmatprep.mubr.msk.f32.mxu0 %vm312_vm0, %v311_v0  ;;  %v26_v2 = vld [vmem:[#allocation2] sm:$0xff]  ;;  %v27_v4 = vld [vmem:[#allocation2 + $0x8] sm:$0xff]  ;;  %v28_v5 = vld [vmem:[#allocation2 + $0x10] sm:$0xff] }
  0x14   :  { %254 = vmatprep.subr.bf16.mxu1 %v313_v1  ;;  %251 = vmatprep.mubr.msk.f32.mxu1 %vm312_vm0, %v311_v0  ;;  %v25_v3 = vld [vmem:[%s347_s0] sm:$0xff]  ;;  %v29_v6 = vld [vmem:[#allocation2 + $0x18] sm:$0xff]  ;;  %v255_v8 = vpack.c.bf16 %v28_v5, %v27_v4  ;;  %v31_v10 = vld [vmem:[#allocation2 + $0x28] sm:$0xff] }
  0x15   :  { %215 = vmatpush3.msra.mxu0 %v26_v2  ;;  %v30_v7 = vld [vmem:[#allocation2 + $0x20] sm:$0xff]  ;;  %v32_v11 = vld [vmem:[#allocation2 + $0x30] sm:$0xff]  ;;  %v33_v13 = vld [vmem:[#allocation2 + $0x38] sm:$0xff] }
  0x16   :  { %217 = vmatmul.mubr.msk.f32.vlgmr.msra.gmra.mrb[0].mxu0 %vm43_vm1, %v25_v3  ;;  %256 = vmatpush3.bf16.msra.mxu1 %v255_v8  ;;  %v258_v9 = vpack.c.bf16 %v30_v7, %v29_v6  ;;  %v261_v12 = vpack.c.bf16 %v32_v11, %v31_v10  ;;  %v34_v14 = vld [vmem:[#allocation2 + $0x40] sm:$0xff]  ;;  %v35_v16 = vld [vmem:[#allocation2 + $0x48] sm:$0xff]  ;;  %v36_v17 = vld [vmem:[#allocation2 + $0x50] sm:$0xff] }
  0x17   :  { %257 = vmatprep.subr.bf16.mxu1 %v313_v1  ;;  %v264_v15 = vpack.c.bf16 %v34_v14, %v33_v13  ;;  %v267_v18 = vpack.c.bf16 %v36_v17, %v35_v16  ;;  %v37_v19 = vld [vmem:[#allocation2 + $0x58] sm:$0xff]  ;;  %v38_v20 = vld [vmem:[#allocation2 + $0x60] sm:$0xff]  ;;  %v39_v22 = vld [vmem:[#allocation2 + $0x68] sm:$0xff] }
  0x18   :  { %v270_v21 = vpack.c.bf16 %v38_v20, %v37_v19  ;;  %v40_v23 = vld [vmem:[#allocation2 + $0x70] sm:$0xff]  ;;  %v41_v25 = vld [vmem:[#allocation2 + $0x78] sm:$0xff]  ;;  %v42_v26 = vld [vmem:[#allocation2 + $0x80] sm:$0xff] }
  0x19   :  { %v273_v24 = vpack.c.bf16 %v40_v23, %v39_v22  ;;  %v276_v27 = vpack.c.bf16 %v42_v26, %v41_v25 }
  0x1a   :  { %259 = vmatpush3.bf16.msra.mxu1 %v258_v9 }
  0x1b   :  { %260 = vmatprep.subr.bf16.mxu1 %v313_v1 }
  0x1e   :  { %262 = vmatpush3.bf16.msra.mxu1 %v261_v12 }
  0x1f   :  { %263 = vmatprep.subr.bf16.mxu1 %v313_v1 }
  0x22   :  { %265 = vmatpush3.bf16.msra.mxu1 %v264_v15 }
  0x23   :  { %266 = vmatprep.subr.bf16.mxu1 %v313_v1 }
  0x26   :  { %268 = vmatpush3.bf16.msra.mxu1 %v267_v18 }
  0x27   :  { %269 = vmatprep.subr.bf16.mxu1 %v313_v1 }
  0x2a   :  { %271 = vmatpush3.bf16.msra.mxu1 %v270_v21 }
  0x2b   :  { %272 = vmatprep.subr.bf16.mxu1 %v313_v1 }
  0x2e   :  { %274 = vmatpush3.bf16.msra.mxu1 %v273_v24 }
  0x2f   :  { %275 = vmatprep.subr.bf16.mxu1 %v313_v1 }
  0x32   :  { %277 = vmatpush3.bf16.msra.mxu1 %v276_v27 }
  0xe9   :  { %v113_v28 = vpop.f32.mrb[0].mxu0 }
  0xea   :  { %v117_v29 = vmax.f32 %v113_v28, 0.0  ;;  %v218_v30 = vpop.f32.mrb[1].mxu0 }
  0xec   :  { %252 = vmatmul.mubr.f32.vlgmr.msra.gmra.mrb[0].mxu1 %v117_v29 }
 0x1bf   :  { %v184_v31 = vpop.f32.mrb[0].mxu1 }
 0x1c0   :  { %188 = vst [vmem:[%s349_s2] sm:$0xff] %v184_v31  ;;  %v253_v32 = vpop.f32.mrb[1].mxu1 }
 0x1c1   :  { %193 = vsyncpa [#allocation3], 1 }

</bundles_post_ra>
